<compile_context>
chip_gen: v6e
topology: v6e:2x2x1
jax: 0.10.0
libtpu: 0.0.40
codegen_flags: <defaults>
</compile_context>

<pallas_src>
import jax
import jax.numpy as jnp
import numpy as np
from jax.experimental import pallas as pl
from jax.experimental.pallas import tpu as pltpu


# Per in/out block buffer budget.  4 buffers live at once (in+out, each
# double-buffered) -> <= 8 MiB total: fits every TPU generation's default
# scoped-VMEM limit without setting vmem_limit_bytes.
_MAX_BLOCK_BYTES = 2 * 1024 * 1024


def _gain_from_t(t_i32, total_len, fade_len):
    """Linear torchaudio Fade gain at integer time index t (int32 array)."""
    t = t_i32.astype(jnp.float32)
    if fade_len > 1:
        inv = np.float32(1.0 / (fade_len - 1))
        fade_in = jnp.clip(t * inv, 0.0, 1.0)
        fade_out = jnp.clip((np.float32(total_len - 1) - t) * inv, 0.0, 1.0)
        return fade_in * fade_out
    if fade_len == 1:
        # linspace(0, 1, 1) == [0]: fade-in zeroes sample 0 only; fade-out is identity.
        return jnp.where(t_i32 < 1, jnp.float32(0.0), jnp.float32(1.0))
    # fade_len == 0 -> identity gain.
    return jnp.ones(t_i32.shape, jnp.float32)


def _pick_width(T):
    """Largest lane width W (multiple of 128, divides T) giving >= 8 rows, else None."""
    for w in (2048, 1920, 1792, 1664, 1536, 1408, 1280, 1152, 1024, 896, 768,
              640, 512, 384, 256, 128):
        if T % w == 0 and T // w >= 8:
            return w
    return None


def _fading_dense(x, T, fade_len, width):
    """Sublane/lane-dense path for small batch: x [B, T] with T % width == 0."""
    B = x.shape[0]
    n_rows = T // width
    itemsize = jnp.dtype(x.dtype).itemsize
    max_rows = max(8, _MAX_BLOCK_BYTES // (width * itemsize))

    if n_rows <= 8:
        tile_r = n_rows                      # full extent (< 8 rows is allowed)
    else:
        tile_r = max(8, (min(n_rows, max_rows) // 8) * 8)
        # Keep >= 2 row blocks when batch alone cannot feed both v7x TensorCores.
        if B == 1 and tile_r >= n_rows and n_rows >= 16:
            tile_r = max(8, (((n_rows + 1) // 2 + 7) // 8) * 8)
    n_rblocks = pl.cdiv(n_rows, tile_r)

    def kernel(x_ref, o_ref):
        rb = pl.program_id(1)
        row = jax.lax.broadcasted_iota(jnp.int32, (tile_r, width), 0) + rb * tile_r
        col = jax.lax.broadcasted_iota(jnp.int32, (tile_r, width), 1)
        t = row * width + col                         # exact int32 time index
        gain = _gain_from_t(t, T, fade_len).astype(o_ref.dtype)
        o_ref[0] = x_ref[0] * gain

    x3 = x.reshape(B, n_rows, width)                  # contiguous -> free reshape
    out = pl.pallas_call(
        kernel,
        out_shape=jax.ShapeDtypeStruct((B, n_rows, width), x.dtype),
        grid_spec=pltpu.PrefetchScalarGridSpec(
            num_scalar_prefetch=0,
            grid=(B, n_rblocks),
            in_specs=[pl.BlockSpec((1, tile_r, width), lambda b, r: (b, r, 0))],
            out_specs=pl.BlockSpec((1, tile_r, width), lambda b, r: (b, r, 0)),
        ),
        compiler_params=pltpu.CompilerParams(
            dimension_semantics=("parallel", "parallel")),
    )(x3)
    return out.reshape(B, T)


def _fading_rowmajor(x, T, fade_len):
    """Fallback path: batch on sublanes, time on lanes (B >= 8, or T % 128 != 0)."""
    B = x.shape[0]
    itemsize = jnp.dtype(x.dtype).itemsize
    tile_b = B if B <= 8 else 8
    budget_elems = _MAX_BLOCK_BYTES // itemsize

    if tile_b * T <= budget_elems:
        tile_t = T                                    # full time extent in one block
    else:
        tile_t = max(128, (budget_elems // tile_b) // 128 * 128)

    def kernel(x_ref, o_ref):
        jt = pl.program_id(1)
        col = jax.lax.broadcasted_iota(jnp.int32, (1, tile_t), 1)
        t = col + jt * tile_t                         # exact int32 time index
        gain = _gain_from_t(t, T, fade_len).astype(o_ref.dtype)   # (1, tile_t)
        o_ref[...] = x_ref[...] * gain                # broadcast over tile_b rows

    return pl.pallas_call(
        kernel,
        out_shape=jax.ShapeDtypeStruct((B, T), x.dtype),
        grid_spec=pltpu.PrefetchScalarGridSpec(
            num_scalar_prefetch=0,
            grid=(pl.cdiv(B, tile_b), pl.cdiv(T, tile_t)),
            in_specs=[pl.BlockSpec((tile_b, tile_t), lambda i, j: (i, j))],
            out_specs=pl.BlockSpec((tile_b, tile_t), lambda i, j: (i, j)),
        ),
        compiler_params=pltpu.CompilerParams(
            dimension_semantics=("parallel", "parallel")),
    )(x)


def fading(audio, fade_ratio=0.5):
    """JAX/Pallas equivalent of Fading.forward.  audio: [B, T] or [T]."""
    squeeze = audio.ndim == 1
    x = audio[None, :] if squeeze else audio
    B, T = x.shape
    fade_len = int(T * fade_ratio)                    # matches int(size(-1) * ratio)

    width = _pick_width(T) if B < 8 else None
    if width is not None:
        out = _fading_dense(x, T, fade_len, width)
    else:
        out = _fading_rowmajor(x, T, fade_len)
    return out[0] if squeeze else out


def _reference(audio, fade_ratio=0.5):
    """Pure-numpy reference mirroring torchaudio.transforms.Fade (linear)."""
    x = np.asarray(audio, dtype=np.float64)
    squeeze = x.ndim == 1
    if squeeze:
        x = x[None, :]
    T = x.shape[-1]
    L = int(T * fade_ratio)
    fade_in = np.ones(T)
    fade_out = np.ones(T)
    if L > 0:
        ramp = np.linspace(0.0, 1.0, L)
        fade_in[:L] = ramp
        fade_out[T - L:] = 1.0 - ramp
    y = x * np.clip(fade_in, 0, 1) * np.clip(fade_out, 0, 1)
    return y[0] if squeeze else y


if __name__ == "__main__":
    key = jax.random.PRNGKey(0)
    k1, k2, k3, k4 = jax.random.split(key, 4)

    # 2-D, small batch -> sublane/lane-dense reshaped path
    a = jax.random.normal(k1, (4, 1024), dtype=jnp.float32)
    out = jax.block_until_ready(fading(a, 0.5))
    assert out.shape == a.shape and out.dtype == a.dtype
    np.testing.assert_allclose(np.asarray(out), _reference(np.asarray(a), 0.5),
                               rtol=1e-5, atol=1e-5)

    # 1-D path (wrapper makes B=1, dense reshape keeps vregs full)
    b = jax.random.normal(k2, (4096,), dtype=jnp.float32)
    out1d = jax.block_until_ready(fading(b, 0.5))
    np.testing.assert_allclose(np.asarray(out1d), _reference(np.asarray(b), 0.5),
                               rtol=1e-5, atol=1e-5)

    # batch >= 8 and T not a multiple of 128 -> row-major fallback path
    c = jax.random.normal(k3, (16, 1000), dtype=jnp.float32)
    outc = jax.block_until_ready(fading(c, 0.1))
    np.testing.assert_allclose(np.asarray(outc), _reference(np.asarray(c), 0.1),
                               rtol=1e-5, atol=1e-5)

    # dense path with a non-dividing (padded) last row-block and non-default ratio
    d = jax.random.normal(k4, (2, 1280), dtype=jnp.float32)
    outd = jax.block_until_ready(fading(d, 0.25))
    np.testing.assert_allclose(np.asarray(outd), _reference(np.asarray(d), 0.25),
                               rtol=1e-5, atol=1e-5)

    print("KERNEL_OK")
</pallas_src>

<mosaic_0001>
module attributes {stable_mosaic.version = 11 : i64} {
  func.func @kernel(%arg0: i32, %arg1: i32, %arg2: memref<1x8x128xf32, #tpu.memory_space<vmem>>, %arg3: memref<1x8x128xf32, #tpu.memory_space<vmem>>) attributes {dimension_semantics = [#tpu.dimension_semantics<parallel>, #tpu.dimension_semantics<parallel>], iteration_bounds = array<i64: 4, 1>, scalar_prefetch = 0 : i64, scratch_operands = 0 : i64, tpu.core_type = #tpu.core_type<tc>, window_params = [{transform_indices = @transform_0, window_bounds = array<i64: 1, 8, 128>}, {transform_indices = @transform_1, window_bounds = array<i64: 1, 8, 128>}]} {
    %0 = tpu.iota {dimensions = array<i32: 0>} : vector<8x128xi32>
    %c8_i32 = arith.constant 8 : i32
    %1 = arith.muli %arg1, %c8_i32 : i32
    %2 = vector.broadcast %1 : i32 to vector<8x128xi32>
    %3 = arith.addi %0, %2 : vector<8x128xi32>
    %4 = tpu.iota {dimensions = array<i32: 1>} : vector<8x128xi32>
    %c128_i32 = arith.constant 128 : i32
    %5 = vector.broadcast %c128_i32 : i32 to vector<8x128xi32>
    %6 = arith.muli %3, %5 : vector<8x128xi32>
    %7 = arith.addi %6, %4 : vector<8x128xi32>
    %8 = arith.sitofp %7 : vector<8x128xi32> to vector<8x128xf32>
    %cst = arith.constant 0.00195694715 : f32
    %9 = vector.broadcast %cst : f32 to vector<8x128xf32>
    %10 = arith.mulf %8, %9 : vector<8x128xf32>
    %cst_0 = arith.constant 0.000000e+00 : f32
    %cst_1 = arith.constant 1.000000e+00 : f32
    %11 = vector.broadcast %cst_0 : f32 to vector<8x128xf32>
    %12 = arith.maximumf %11, %10 : vector<8x128xf32>
    %13 = vector.broadcast %cst_1 : f32 to vector<8x128xf32>
    %14 = arith.minimumf %13, %12 : vector<8x128xf32>
    %cst_2 = arith.constant 1.023000e+03 : f32
    %15 = vector.broadcast %cst_2 : f32 to vector<8x128xf32>
    %16 = arith.subf %15, %8 : vector<8x128xf32>
    %cst_3 = arith.constant 0.00195694715 : f32
    %17 = vector.broadcast %cst_3 : f32 to vector<8x128xf32>
    %18 = arith.mulf %16, %17 : vector<8x128xf32>
    %cst_4 = arith.constant 0.000000e+00 : f32
    %cst_5 = arith.constant 1.000000e+00 : f32
    %19 = vector.broadcast %cst_4 : f32 to vector<8x128xf32>
    %20 = arith.maximumf %19, %18 : vector<8x128xf32>
    %21 = vector.broadcast %cst_5 : f32 to vector<8x128xf32>
    %22 = arith.minimumf %21, %20 : vector<8x128xf32>
    %23 = arith.mulf %14, %22 : vector<8x128xf32>
    %c0 = arith.constant 0 : index
    %c0_6 = arith.constant 0 : index
    %c0_7 = arith.constant 0 : index
    %24 = vector.load %arg2[%c0, %c0_6, %c0_7] : memref<1x8x128xf32, #tpu.memory_space<vmem>>, vector<1x8x128xf32>
    %25 = vector.shape_cast %24 : vector<1x8x128xf32> to vector<8x128xf32>
    %26 = arith.mulf %25, %23 : vector<8x128xf32>
    %c0_8 = arith.constant 0 : index
    %c0_9 = arith.constant 0 : index
    %c0_10 = arith.constant 0 : index
    %27 = vector.load %arg3[%c0_8, %c0_9, %c0_10] : memref<1x8x128xf32, #tpu.memory_space<vmem>>, vector<1x8x128xf32>
    %28 = vector.shape_cast %27 : vector<1x8x128xf32> to vector<8x128xf32>
    %29 = vector.shape_cast %26 : vector<8x128xf32> to vector<1x8x128xf32>
    tpu.vector_store %arg3[%c0_8, %c0_9, %c0_10], %29 {strides = array<i32>} : memref<1x8x128xf32, #tpu.memory_space<vmem>>, vector<1x8x128xf32>,
    return
  }
  func.func @transform_0(%arg0: i32, %arg1: i32) -> (i32, i32, i32) {
    %c0_i32 = arith.constant 0 : i32
    %c0_i32_0 = arith.constant 0 : i32
    return %arg0, %arg1, %c0_i32 : i32, i32, i32
  }
  func.func @transform_1(%arg0: i32, %arg1: i32) -> (i32, i32, i32) {
    %c0_i32 = arith.constant 0 : i32
    %c0_i32_0 = arith.constant 0 : i32
    return %arg0, %arg1, %c0_i32 : i32, i32, i32
  }
}

</mosaic_0001>

<bundles_post_ra>
// kernel: tpu_custom_call.1
= control target key start
LH: loop header
LB: loop body
LE: loop exit
PB: predicated region body
PF: predicated region fallthrough
CT: control target
= control target key end

     0   :  { %6 = vsyncpa [#allocation3], 0  ;;  %s594_s0 = inlined_call_operand.hbm [shape: f32[4,8,128], index: 0, kind: input, shape index: {}]   ;;  %s595_s1 = inlined_call_operand.hbm [shape: f32[4,8,128], index: 1, kind: output, shape index: {}]  }
   0x1   :  { %8 = vsyncpa [#allocation3 + $0x1], 0 }
   0x2   :  { %9 = vsyncpa [#allocation4], 0 }
   0x3   :  { %11 = vsyncpa [#allocation4 + $0x1], 0  ;;  %s462_s6 = smov 0   ;;  %s464_s7 = smov 0  }
   0x4   :  { %s466_s8 = smov 0   ;;  %s468_s9 = smov 0  }
   0x5   :  { %s470_s10 = smov 0   ;;  %s472_s11 = smov 0  }
   0x6 LB: > { %s265_s12 = sadd.s32 4294967295, %s448_s11   ;;  %s266_s13 = sadd.s32 4294967294, %s448_s11   ;;  %s448_s11 = sphi %s472_s11, %s17_s11   ;;  %s444_s10 = sphi %s470_s10, %s606_s10   ;;  %s440_s9 = sphi %s468_s9, %s605_s9   ;;  %s436_s8 = sphi %s466_s8, %s604_s8   ;;  %s432_s7 = sphi %s464_s7, %s603_s7   ;;  %s428_s6 = sphi %s462_s6, %s602_s6  }
   0x7   : > { %s29_s14 = sadd.s32 1, %s444_s10  ;;  %s38_s15 = sadd.s32 1, %s436_s8 }
   0x8   : > { %p31_p0 = scmp.ge.s32.totalorder %s29_s14, 4  ;;  %p45_p1 = scmp.ne.s32.totalorder %s436_s8, %s432_s7 }
   0x9   : > { %p46_p2 = scmp.eq.s32.totalorder %s448_s11, 0  ;;  %p51_p3 = scmp.ne.s32.totalorder %s432_s7, %s428_s6 }
   0xa   : > { %s608_s14 = smov (%p31_p0, %s29_s14), 0  ;;  %p52_p5 = scmp.eq.s32.totalorder %s265_s12, 0 }
   0xb   : > { %p503_p4 = por %p46_p2, %p45_p1  ;;  %s33_s17 = ssub.s32 %s444_s10, %s608_s14 }
   0xc   : > { %p77_p6 = scmp.eq.s32.totalorder %s265_s12, 3  ;;  %p36_p7 = scmp.eq.s32.totalorder %s33_s17, 0 }
   0xd   : > { %p509_p8 = por %p52_p5, %p51_p3  ;;  %p83_p10 = scmp.eq.s32.totalorder %s266_s13, 3 }
   0xe   : > { %p513_p9 = por %p77_p6, %p45_p1  ;;  %p290_p12 = scmp.lt.s32.totalorder %s448_s11, 4 }
   0xf   : > { %s518_s20 = scalar_select %p36_p7, %s436_s8, %s38_s15  }
  0x10   : > { %p520_p11 = por %p83_p10, %p51_p3  ;;  %s103_s22 = sand.u32 1, %s436_s8  }
  0x11   : > { %s269_s23 = sshll.u32 %s103_s22, 3  ;;  %s270_s24 = sshll.u32 %s444_s10, 7 }
  0x12   : > { %s599_s21 = scalar_select %p520_p11, 1, 0 }
  0x13   : > { %s113_s27 = scalar_lea.hbm %s594_s0, %s270_s24  ;;  %s107_s28 = scalar_lea.vmem [#allocation2], %s269_s23 }
  0x14   : > { %s115_s29 = sshll.u32 %s107_s28, 4  ;;  %p532_p13 = pnand %p290_p12, %p503_p4  ;;  %s116_s29 = int_to_ptr.vmem [resolvable:$true] %s115_s29 }
  0x15   : > { %p271_p0 = scmp.ge.s32.totalorder %s448_s11, 1  ;;  %p120_p1 = scmp.lt.s32.totalorder %s448_s11, 5 }
  0x16   : > { %s104_s2 = scalar_lea.sflag [#allocation3], %s103_s22  ;;  %p342_p2 = pneg %p532_p13 }
  0x17   : > { %s353_s3 = scalar_lea.vmem %s116_s29, 128  ;;  %s450_s4 = smov [#allocation2]  }
  0x18   : > { %p354_p3 = scmp.ne.s32.totalorder %s116_s29, %s353_s3  ;;  %s358_s5 = sshll.u32 %s450_s4, 4  ;;  %s359_s5 = int_to_ptr.vmem [resolvable:$false] %s358_s5 }
  0x19   : > { %s360_s12 = scalar_lea.vmem %s359_s5, 256  ;;  %p361_p7 = scmp.lt.s32.totalorder %s116_s29, %s359_s5 }
  0x1a   : > { %p356_p5 = pnand %p354_p3, %p342_p2  ;;  %p362_p10 = scmp.lt.s32.totalorder %s360_s12, %s353_s3 }
  0x1c   : > { %p357_p6 = pneg %p356_p5  ;;  %p363_p4 = por %p362_p10, %p361_p7 }
  0x1e   : > { %p364_p12 = pnand %p363_p4, %p357_p6 }
  0x20   : > { %367 = shalt.err (!%p364_p12)
}
  0x21   : > { %285 = dma.hbm_to_vmem [thread:$0]  (!%p532_p13), %s113_s27, 128, %s116_s29, %s104_s2  }
  0x22   : > { %p121_p11 = pnand %p271_p0, %p120_p1 }
  0x23   : > { %s547_s13 = sand.u32 (!%p121_p11), 1, %s432_s7  }
  0x24   : > { %124 = sbr.rel (%p121_p11) target bundleno = 77 (0x4d), region = 24  ;;  %s272_s15 = sshll.u32 (!%p121_p11), %s547_s13, 3 }
  0x25   : > { %s127_s16 = scalar_lea.sflag (!%p121_p11), [#allocation3], %s547_s13  ;;  %s130_s17 = scalar_lea.vmem (!%p121_p11), [#allocation2], %s272_s15 }
  0x29   : > { %419 = dma.done.wait (%p509_p8), %s127_s16, 128  }
  0x2a   : > { %421 = vsyncadd (%p509_p8), %s127_s16, 4294967168  ;;  %v149_v0 = vlaneseq  ;;  %v167_v13 = vld [vmem:[%s130_s17] sm:$0xff]  ;;  %s148_s22 = scalar_lea.vmem [#allocation5], %s272_s15  ;;  %s275_s23 = sshll.u32 %s440_s9, 7 }
  0x2b   : > { %s185_s18 = sshll.u32 %s148_s22, 4  ;;  %s183_s26 = scalar_lea.hbm %s595_s1, %s275_s23  ;;  %s186_s18 = int_to_ptr.vmem [resolvable:$true] %s185_s18 }
  0x2c   : > { %v150_v1 = vshrl.u32 %v149_v0, 7  ;;  %v155_v2 = vand.u32 127, %v149_v0  ;;  %s171_s27 = scalar_lea.sflag [#allocation4], %s547_s13  ;;  %s368_s28 = scalar_lea.vmem %s186_s18, 128 }
  0x2d   : > { %p369_p8 = scmp.ne.s32.totalorder %s186_s18, %s368_s28  ;;  %s451_s29 = smov [#allocation5]  }
  0x2e   : > { %v156_v3 = vmul.u32 128, %v150_v1  ;;  %s372_s30 = sshll.u32 %s451_s29, 4  ;;  %s373_s30 = int_to_ptr.vmem [resolvable:$false] %s372_s30 }
  0x2f   : > { %p370_p11 = pnand %p369_p8, %p513_p9  ;;  %s374_s2 = scalar_lea.vmem %s373_s30, 256 }
  0x30   : > { %v157_v4 = vadd.s32 %v156_v3, %v155_v2  ;;  %p375_p0 = scmp.lt.s32.totalorder %s186_s18, %s373_s30  ;;  %p376_p1 = scmp.lt.s32.totalorder %s374_s2, %s368_s28 }
  0x31   : > { %p371_p13 = pneg %p370_p11 }
  0x32   : > { %v158_v5 = vcvt.s32.f32 %v157_v4  ;;  %p377_p2 = por %p376_p1, %p375_p0 }
  0x34   : > { %v159_v6 = vmul.f32 0.0019569471, %v158_v5  ;;  %v162_v7 = vsub.f32 1023.0, %v158_v5  ;;  %p378_p3 = pnand %p377_p2, %p371_p13 }
  0x36   : > { %v160_v8 = vmax.f32 %v159_v6, 0.0  ;;  %v163_v9 = vmul.f32 0.0019569471, %v162_v7 }
  0x38   : > { %v161_v10 = vmin.f32 %v160_v8, 1.0  ;;  %v164_v11 = vmax.f32 %v163_v9, 0.0 }
  0x3a   : > { %v165_v12 = vmin.f32 %v164_v11, 1.0 }
  0x3c   : > { %v166_v14 = vmul.f32 %v165_v12, %v161_v10 }
  0x3e   : > { %v168_v15 = vmul.f32 %v167_v13, %v166_v14 }
  0x40   : > { %169 = vst [vmem:[%s148_s22] sm:$0xff] %v168_v15 }
  0x41   : > { %381 = shalt.err (!%p378_p3)
}
  0x42   : > { %s382_s9 = scalar_lea.hbm %s183_s26, 128  ;;  %s386_s5 = scalar_lea.hbm %s595_s1, 512 }
  0x43   : > { %p383_p5 = scmp.ne.s32.totalorder %s183_s26, %s382_s9  ;;  %p387_p10 = scmp.lt.s32.totalorder %s183_s26, %s595_s1 }
  0x44   : > { %p388_p4 = scmp.lt.s32.totalorder %s386_s5, %s382_s9 }
  0x45   : > { %p384_p6 = pnand %p383_p5, %p513_p9 }
  0x46   : > { %p389_p12 = por %p388_p4, %p387_p10 }
  0x47   : > { %p385_p7 = pneg %p384_p6 }
  0x49   : > { %p390_p8 = pnand %p389_p12, %p385_p7 }
  0x4b   : > { %393 = shalt.err (!%p390_p8)
}
  0x4c   : > { %280 = dma.vmem_to_hbm [thread:$0]  (%p513_p9), %s186_s18, 128, %s183_s26, %s171_s27  }
  0x4d PF: > { %p291_p11 = scmp.ge.s32.totalorder %s448_s11, 2  ;;  %s197_s15 = sand.u32 1, %s428_s6  }
  0x4e   : > { %p601_p13 = scmp.ne.s32.totalorder %s599_s21, 0  ;;  %s198_s16 = scalar_lea.sflag [#allocation4], %s197_s15 }
  0x50   : > { %p287_p0 = pnand %p291_p11, %p601_p13 }
  0x52   : > { %p288_p1 = pneg %p287_p0 }
  0x54   : > { %423 = dma.done.wait (%p288_p1), %s198_s16, 128  }
  0x55   : > { %425 = vsyncadd (%p288_p1), %s198_s16, 4294967168  ;;  %s17_s11 = sadd.s32 1, %s448_s11   ;;  %s602_s6 = smov %s432_s7 }
  0x56   : > { %p14_p2 = scmp.ge.s32.totalorder %s17_s11, 6   ;;  %s603_s7 = smov %s436_s8 }
  0x57   : > { %s604_s8 = smov %s518_s20  ;;  %s605_s9 = smov %s444_s10 }
  0x58   : > { %s606_s10 = smov %s608_s14  ;;  %16 = sbr.rel (!%p14_p2) target bundleno = 6 (0x6), region = 69 }
  0x5d   :  { %203 = vsyncpa [#allocation3], 1 }
  0x5e   :  { %205 = vsyncpa [#allocation3 + $0x1], 1 }
  0x5f   :  { %206 = vsyncpa [#allocation4], 1 }
  0x60   :  { %208 = vsyncpa [#allocation4 + $0x1], 1 }

</bundles_post_ra>
